<compile_context>
chip_gen: v7x
topology: tpu7x:2x2x1
jax: 0.10.0
libtpu: 0.0.40
codegen_flags: <defaults>
</compile_context>

<pallas_src>
import functools

import jax
import jax.numpy as jnp
from jax.experimental import pallas as pl
from jax.experimental.pallas import tpu as pltpu


def _round_up(n, m):
    return ((n + m - 1) // m) * m


def _choose_batch_tile(b):
    """Batch tile: multiple of 8, <= 256 (keeps the (BB,128) chunk + accumulator
    near-register-resident and matches the MXU-friendly M), and ~B/2 so the
    'parallel' batch axis has >= 2 grid steps whenever B permits (v7x megacore)."""
    bb = _round_up(max(b // 2, 1), 8)
    return max(8, min(256, bb))


def _cnn_pallas(x_flat, wk, bcv, w1p, b1p, w2p, b2p, *, BB, L, C, out_dtype):
    B_pad, SC = x_flat.shape
    COP = wk.shape[1]
    H1P = w1p.shape[2]
    OUTP = w2p.shape[1]
    grid = (B_pad // BB,)

    def kernel(x_ref, wk_ref, bcv_ref, w1_ref, b1_ref, w2_ref, b2_ref, out_ref):
        xv = x_ref[...]                                    # (BB, S*C)   bf16
        wkv = wk_ref[...]                                  # (2C, COP)   bf16
        bcv_v = bcv_ref[...]                               # (1, COP)    f32

        # Conv1d(k=2)+ReLU streamed one time step at a time; each 128-lane conv
        # chunk is contracted into a1 immediately via its fc1 K-slice, so no
        # (BB, L*CO) intermediate ever exists (and conv weights are O(S)-free).
        a1 = jnp.zeros((BB, H1P), jnp.float32)
        for t in range(L):                                 # short, fully unrolled
            xt = xv[:, t * C:(t + 2) * C]                  # (BB, 2C) shifted window
            h = jnp.dot(xt, wkv, preferred_element_type=jnp.float32)
            h = jnp.maximum(h + bcv_v, 0.0)                # (BB, COP) f32, lane-dense
            a1 = a1 + jnp.dot(h.astype(jnp.bfloat16), w1_ref[t],
                              preferred_element_type=jnp.float32)

        a1 = jnp.maximum(a1 + b1_ref[...], 0.0)            # (BB, H1P) f32
        out = jnp.dot(a1.astype(jnp.bfloat16), w2_ref[...],
                      preferred_element_type=jnp.float32) + b2_ref[...]
        out_ref[...] = out.astype(out_ref.dtype)           # (BB, OUTP) lane-dense store

    in_specs = [
        pl.BlockSpec((BB, SC), lambda i: (i, 0)),           # x tile (pipelined over batch)
        pl.BlockSpec((2 * C, COP), lambda i: (0, 0)),        # conv taps [Wk0;Wk1] (resident)
        pl.BlockSpec((1, COP), lambda i: (0, 0)),            # conv bias
        pl.BlockSpec((L, COP, H1P), lambda i: (0, 0, 0)),    # fc1 weight as per-t K-slices
        pl.BlockSpec((1, H1P), lambda i: (0, 0)),            # fc1 bias
        pl.BlockSpec((H1P, OUTP), lambda i: (0, 0)),         # fc2 weight
        pl.BlockSpec((1, OUTP), lambda i: (0, 0)),           # fc2 bias
    ]
    out_spec = pl.BlockSpec((BB, OUTP), lambda i: (i, 0))

    # Explicit scoped-VMEM budget from the (double-buffered) operand blocks + slack.
    def nbytes(a):
        return a.size * a.dtype.itemsize
    block_bytes = (BB * SC * x_flat.dtype.itemsize
                   + nbytes(wk) + nbytes(bcv) + nbytes(w1p) + nbytes(b1p)
                   + nbytes(w2p) + nbytes(b2p)
                   + BB * OUTP * jnp.dtype(out_dtype).itemsize)
    vmem_limit = int(min(max(2 * block_bytes + (2 << 20), 16 << 20), 100 << 20))

    return pl.pallas_call(
        kernel,
        out_shape=jax.ShapeDtypeStruct((B_pad, OUTP), out_dtype),
        grid=grid,
        in_specs=in_specs,
        out_specs=out_spec,
        compiler_params=pltpu.CompilerParams(
            dimension_semantics=("parallel",),   # batch axis: megacore-shardable on v7x
            vmem_limit_bytes=vmem_limit),
    )(x_flat, wk, bcv, w1p, b1p, w2p, b2p)


@jax.jit
def cnn_forward(x, params):
    """x: (B, seq_length, input_dim) float32 -> (B, output_dim) float32."""
    w_conv, b_conv, w_fc1, b_fc1, w_fc2, b_fc2 = params
    B, S, C = x.shape
    L = S - 1
    CO = w_conv.shape[0]            # 64
    H1 = w_fc1.shape[0]             # 50
    OUT = w_fc2.shape[0]            # output_dim

    COP = _round_up(CO, 128)        # lane-dense conv-chunk width (64 -> 128)
    H1P = _round_up(H1, 128)        # lane-dense fc1 width
    OUTP = _round_up(OUT, 128)      # lane-dense output width
    f32, bf16 = jnp.float32, jnp.bfloat16

    # ---- one-time weight rearrangement (plain XLA glue, all static shapes) ----
    # Conv taps stacked for the in-kernel 2C window:  h_t = [x_t ; x_{t+1}] @ [Wk0 ; Wk1]
    wk = jnp.zeros((2 * C, COP), bf16)
    wk = wk.at[:C, :CO].set(w_conv[:, :, 0].T.astype(bf16))
    wk = wk.at[C:, :CO].set(w_conv[:, :, 1].T.astype(bf16))
    bcv = jnp.zeros((1, COP), f32).at[0, :CO].set(b_conv.astype(f32))

    # fc1 weight regrouped into per-time-step K-slices, matching PyTorch's channel-major
    # flatten of the (B, 64, L) conv output:  w1p[t, o, j] = w_fc1[j, o*L + t]
    w1_3d = jnp.transpose(w_fc1.reshape(H1, CO, L), (2, 1, 0))        # (L, CO, H1)
    w1p = jnp.zeros((L, COP, H1P), bf16).at[:, :CO, :H1].set(w1_3d.astype(bf16))
    b1p = jnp.zeros((1, H1P), f32).at[0, :H1].set(b_fc1.astype(f32))

    w2p = jnp.zeros((H1P, OUTP), bf16).at[:H1, :OUT].set(w_fc2.T.astype(bf16))
    b2p = jnp.zeros((1, OUTP), f32).at[0, :OUT].set(b_fc2.astype(f32))

    # ---- batch tiling: multiple-of-8 tile, zero-pad B so the grid always divides ----
    BB = _choose_batch_tile(B)
    B_pad = _round_up(max(B, BB), BB)
    x_flat = jnp.zeros((B_pad, S * C), bf16).at[:B].set(x.reshape(B, S * C).astype(bf16))

    out_pad = _cnn_pallas(x_flat, wk, bcv, w1p, b1p, w2p, b2p,
                          BB=BB, L=L, C=C, out_dtype=f32)
    return out_pad[:B, :OUT]


def cnn_reference(x, params):
    """Pure-JAX (f32) replica of the PyTorch forward, for verification."""
    w_conv, b_conv, w_fc1, b_fc1, w_fc2, b_fc2 = params
    x_t = jnp.transpose(x, (0, 2, 1))                                  # (B, C, S)
    conv = (jnp.einsum('oc,bct->bot', w_conv[:, :, 0], x_t[:, :, :-1]) +
            jnp.einsum('oc,bct->bot', w_conv[:, :, 1], x_t[:, :, 1:]) +
            b_conv[None, :, None])                                     # (B, 64, L)
    h = jnp.maximum(conv, 0.0)
    flat = h.reshape(h.shape[0], -1)                                   # (B, 64*L) channel-major
    h1 = jnp.maximum(flat @ w_fc1.T + b_fc1, 0.0)
    return h1 @ w_fc2.T + b_fc2


def init_params(key, input_dim, output_dim, seq_length):
    ks = jax.random.split(key, 6)
    L = seq_length - 1
    w_conv = 0.1 * jax.random.normal(ks[0], (64, input_dim, 2), jnp.float32)
    b_conv = 0.1 * jax.random.normal(ks[1], (64,), jnp.float32)
    w_fc1 = 0.05 * jax.random.normal(ks[2], (50, 64 * L), jnp.float32)
    b_fc1 = 0.05 * jax.random.normal(ks[3], (50,), jnp.float32)
    w_fc2 = 0.1 * jax.random.normal(ks[4], (output_dim, 50), jnp.float32)
    b_fc2 = 0.1 * jax.random.normal(ks[5], (output_dim,), jnp.float32)
    return (w_conv, b_conv, w_fc1, b_fc1, w_fc2, b_fc2)


if __name__ == "__main__":
    B, SEQ, IN_DIM, OUT_DIM = 2, 8, 4, 3

    key = jax.random.PRNGKey(0)
    k_x, k_p = jax.random.split(key)
    x = jax.random.normal(k_x, (B, SEQ, IN_DIM), jnp.float32)
    params = init_params(k_p, IN_DIM, OUT_DIM, SEQ)

    out = jax.block_until_ready(cnn_forward(x, params))
    ref = jax.block_until_ready(cnn_reference(x, params))

    assert out.shape == (B, OUT_DIM), out.shape
    # bf16 MXU operands with f32 accumulation -> small rounding vs the f32 reference.
    assert jnp.allclose(out, ref, atol=2e-2, rtol=2e-2), (out, ref)
    print("KERNEL_OK")
</pallas_src>

<mosaic_0001>
module attributes {stable_mosaic.version = 11 : i64} {
  func.func @kernel(%arg0: i32, %arg1: memref<8x32xbf16, #tpu.memory_space<vmem>>, %arg2: memref<8x128xbf16, #tpu.memory_space<vmem>>, %arg3: memref<1x128xf32, #tpu.memory_space<vmem>>, %arg4: memref<7x128x128xbf16, #tpu.memory_space<vmem>>, %arg5: memref<1x128xf32, #tpu.memory_space<vmem>>, %arg6: memref<128x128xbf16, #tpu.memory_space<vmem>>, %arg7: memref<1x128xf32, #tpu.memory_space<vmem>>, %arg8: memref<8x128xf32, #tpu.memory_space<vmem>>) attributes {dimension_semantics = [#tpu.dimension_semantics<parallel>], iteration_bounds = array<i64: 1>, scalar_prefetch = 0 : i64, scratch_operands = 0 : i64, tpu.core_type = #tpu.core_type<tc>, window_params = [{transform_indices = @transform_0, window_bounds = array<i64: 8, 32>}, {pipeline_mode = #tpu.pipeline_mode<synchronous>, transform_indices = @transform_1, window_bounds = array<i64: 8, 128>}, {pipeline_mode = #tpu.pipeline_mode<synchronous>, transform_indices = @transform_2, window_bounds = array<i64: 1, 128>}, {pipeline_mode = #tpu.pipeline_mode<synchronous>, transform_indices = @transform_3, window_bounds = array<i64: 7, 128, 128>}, {pipeline_mode = #tpu.pipeline_mode<synchronous>, transform_indices = @transform_4, window_bounds = array<i64: 1, 128>}, {pipeline_mode = #tpu.pipeline_mode<synchronous>, transform_indices = @transform_5, window_bounds = array<i64: 128, 128>}, {pipeline_mode = #tpu.pipeline_mode<synchronous>, transform_indices = @transform_6, window_bounds = array<i64: 1, 128>}, {transform_indices = @transform_7, window_bounds = array<i64: 8, 128>}]} {
    %c0 = arith.constant 0 : index
    %c0_0 = arith.constant 0 : index
    %0 = vector.load %arg1[%c0, %c0_0] : memref<8x32xbf16, #tpu.memory_space<vmem>>, vector<8x32xbf16>
    %c0_1 = arith.constant 0 : index
    %c0_2 = arith.constant 0 : index
    %1 = vector.load %arg2[%c0_1, %c0_2] : memref<8x128xbf16, #tpu.memory_space<vmem>>, vector<8x128xbf16>
    %c0_3 = arith.constant 0 : index
    %c0_4 = arith.constant 0 : index
    %2 = vector.load %arg3[%c0_3, %c0_4] : memref<1x128xf32, #tpu.memory_space<vmem>>, vector<1x128xf32>
    %cst = arith.constant 0.000000e+00 : f32
    %3 = vector.broadcast %cst : f32 to vector<8x128xf32>
    %4 = vector.extract_strided_slice %0 {offsets = [0, 0], sizes = [8, 8], strides = [1, 1]} : vector<8x32xbf16> to vector<8x8xbf16>
    %cst_5 = arith.constant dense<0.000000e+00> : vector<8x128xf32>
    %5 = tpu.matmul %4, %1, %cst_5 {dimension_numbers = #tpu.dot_dimension_numbers<[1], [0], [0], [1], [0, 0, 1, 1], [], []>} : vector<8x8xbf16>, vector<8x128xbf16>, vector<8x128xf32> -> vector<8x128xf32>
    %6 = vector.broadcast %2 : vector<1x128xf32> to vector<8x128xf32>
    %7 = arith.addf %5, %6 : vector<8x128xf32>
    %cst_6 = arith.constant 0.000000e+00 : f32
    %8 = vector.broadcast %cst_6 : f32 to vector<8x128xf32>
    %9 = arith.maximumf %7, %8 : vector<8x128xf32>
    %10 = arith.truncf %9 : vector<8x128xf32> to vector<8x128xbf16>
    %c0_7 = arith.constant 0 : index
    %c0_8 = arith.constant 0 : index
    %c0_9 = arith.constant 0 : index
    %11 = vector.load %arg4[%c0_7, %c0_8, %c0_9] : memref<7x128x128xbf16, #tpu.memory_space<vmem>>, vector<1x128x128xbf16>
    %12 = vector.shape_cast %11 : vector<1x128x128xbf16> to vector<128x128xbf16>
    %cst_10 = arith.constant dense<0.000000e+00> : vector<8x128xf32>
    %13 = tpu.matmul %10, %12, %cst_10 {dimension_numbers = #tpu.dot_dimension_numbers<[1], [0], [0], [1], [0, 0, 1, 1], [], []>} : vector<8x128xbf16>, vector<128x128xbf16>, vector<8x128xf32> -> vector<8x128xf32>
    %14 = arith.addf %3, %13 : vector<8x128xf32>
    %15 = vector.extract_strided_slice %0 {offsets = [0, 4], sizes = [8, 8], strides = [1, 1]} : vector<8x32xbf16> to vector<8x8xbf16>
    %cst_11 = arith.constant dense<0.000000e+00> : vector<8x128xf32>
    %16 = tpu.matmul %15, %1, %cst_11 {dimension_numbers = #tpu.dot_dimension_numbers<[1], [0], [0], [1], [0, 0, 1, 1], [], []>} : vector<8x8xbf16>, vector<8x128xbf16>, vector<8x128xf32> -> vector<8x128xf32>
    %17 = vector.broadcast %2 : vector<1x128xf32> to vector<8x128xf32>
    %18 = arith.addf %16, %17 : vector<8x128xf32>
    %cst_12 = arith.constant 0.000000e+00 : f32
    %19 = vector.broadcast %cst_12 : f32 to vector<8x128xf32>
    %20 = arith.maximumf %18, %19 : vector<8x128xf32>
    %21 = arith.truncf %20 : vector<8x128xf32> to vector<8x128xbf16>
    %c1 = arith.constant 1 : index
    %c0_13 = arith.constant 0 : index
    %c0_14 = arith.constant 0 : index
    %22 = vector.load %arg4[%c1, %c0_13, %c0_14] : memref<7x128x128xbf16, #tpu.memory_space<vmem>>, vector<1x128x128xbf16>
    %23 = vector.shape_cast %22 : vector<1x128x128xbf16> to vector<128x128xbf16>
    %cst_15 = arith.constant dense<0.000000e+00> : vector<8x128xf32>
    %24 = tpu.matmul %21, %23, %cst_15 {dimension_numbers = #tpu.dot_dimension_numbers<[1], [0], [0], [1], [0, 0, 1, 1], [], []>} : vector<8x128xbf16>, vector<128x128xbf16>, vector<8x128xf32> -> vector<8x128xf32>
    %25 = arith.addf %14, %24 : vector<8x128xf32>
    %26 = vector.extract_strided_slice %0 {offsets = [0, 8], sizes = [8, 8], strides = [1, 1]} : vector<8x32xbf16> to vector<8x8xbf16>
    %cst_16 = arith.constant dense<0.000000e+00> : vector<8x128xf32>
    %27 = tpu.matmul %26, %1, %cst_16 {dimension_numbers = #tpu.dot_dimension_numbers<[1], [0], [0], [1], [0, 0, 1, 1], [], []>} : vector<8x8xbf16>, vector<8x128xbf16>, vector<8x128xf32> -> vector<8x128xf32>
    %28 = vector.broadcast %2 : vector<1x128xf32> to vector<8x128xf32>
    %29 = arith.addf %27, %28 : vector<8x128xf32>
    %cst_17 = arith.constant 0.000000e+00 : f32
    %30 = vector.broadcast %cst_17 : f32 to vector<8x128xf32>
    %31 = arith.maximumf %29, %30 : vector<8x128xf32>
    %32 = arith.truncf %31 : vector<8x128xf32> to vector<8x128xbf16>
    %c2 = arith.constant 2 : index
    %c0_18 = arith.constant 0 : index
    %c0_19 = arith.constant 0 : index
    %33 = vector.load %arg4[%c2, %c0_18, %c0_19] : memref<7x128x128xbf16, #tpu.memory_space<vmem>>, vector<1x128x128xbf16>
    %34 = vector.shape_cast %33 : vector<1x128x128xbf16> to vector<128x128xbf16>
    %cst_20 = arith.constant dense<0.000000e+00> : vector<8x128xf32>
    %35 = tpu.matmul %32, %34, %cst_20 {dimension_numbers = #tpu.dot_dimension_numbers<[1], [0], [0], [1], [0, 0, 1, 1], [], []>} : vector<8x128xbf16>, vector<128x128xbf16>, vector<8x128xf32> -> vector<8x128xf32>
    %36 = arith.addf %25, %35 : vector<8x128xf32>
    %37 = vector.extract_strided_slice %0 {offsets = [0, 12], sizes = [8, 8], strides = [1, 1]} : vector<8x32xbf16> to vector<8x8xbf16>
    %cst_21 = arith.constant dense<0.000000e+00> : vector<8x128xf32>
    %38 = tpu.matmul %37, %1, %cst_21 {dimension_numbers = #tpu.dot_dimension_numbers<[1], [0], [0], [1], [0, 0, 1, 1], [], []>} : vector<8x8xbf16>, vector<8x128xbf16>, vector<8x128xf32> -> vector<8x128xf32>
    %39 = vector.broadcast %2 : vector<1x128xf32> to vector<8x128xf32>
    %40 = arith.addf %38, %39 : vector<8x128xf32>
    %cst_22 = arith.constant 0.000000e+00 : f32
    %41 = vector.broadcast %cst_22 : f32 to vector<8x128xf32>
    %42 = arith.maximumf %40, %41 : vector<8x128xf32>
    %43 = arith.truncf %42 : vector<8x128xf32> to vector<8x128xbf16>
    %c3 = arith.constant 3 : index
    %c0_23 = arith.constant 0 : index
    %c0_24 = arith.constant 0 : index
    %44 = vector.load %arg4[%c3, %c0_23, %c0_24] : memref<7x128x128xbf16, #tpu.memory_space<vmem>>, vector<1x128x128xbf16>
    %45 = vector.shape_cast %44 : vector<1x128x128xbf16> to vector<128x128xbf16>
    %cst_25 = arith.constant dense<0.000000e+00> : vector<8x128xf32>
    %46 = tpu.matmul %43, %45, %cst_25 {dimension_numbers = #tpu.dot_dimension_numbers<[1], [0], [0], [1], [0, 0, 1, 1], [], []>} : vector<8x128xbf16>, vector<128x128xbf16>, vector<8x128xf32> -> vector<8x128xf32>
    %47 = arith.addf %36, %46 : vector<8x128xf32>
    %48 = vector.extract_strided_slice %0 {offsets = [0, 16], sizes = [8, 8], strides = [1, 1]} : vector<8x32xbf16> to vector<8x8xbf16>
    %cst_26 = arith.constant dense<0.000000e+00> : vector<8x128xf32>
    %49 = tpu.matmul %48, %1, %cst_26 {dimension_numbers = #tpu.dot_dimension_numbers<[1], [0], [0], [1], [0, 0, 1, 1], [], []>} : vector<8x8xbf16>, vector<8x128xbf16>, vector<8x128xf32> -> vector<8x128xf32>
    %50 = vector.broadcast %2 : vector<1x128xf32> to vector<8x128xf32>
    %51 = arith.addf %49, %50 : vector<8x128xf32>
    %cst_27 = arith.constant 0.000000e+00 : f32
    %52 = vector.broadcast %cst_27 : f32 to vector<8x128xf32>
    %53 = arith.maximumf %51, %52 : vector<8x128xf32>
    %54 = arith.truncf %53 : vector<8x128xf32> to vector<8x128xbf16>
    %c4 = arith.constant 4 : index
    %c0_28 = arith.constant 0 : index
    %c0_29 = arith.constant 0 : index
    %55 = vector.load %arg4[%c4, %c0_28, %c0_29] : memref<7x128x128xbf16, #tpu.memory_space<vmem>>, vector<1x128x128xbf16>
    %56 = vector.shape_cast %55 : vector<1x128x128xbf16> to vector<128x128xbf16>
    %cst_30 = arith.constant dense<0.000000e+00> : vector<8x128xf32>
    %57 = tpu.matmul %54, %56, %cst_30 {dimension_numbers = #tpu.dot_dimension_numbers<[1], [0], [0], [1], [0, 0, 1, 1], [], []>} : vector<8x128xbf16>, vector<128x128xbf16>, vector<8x128xf32> -> vector<8x128xf32>
    %58 = arith.addf %47, %57 : vector<8x128xf32>
    %59 = vector.extract_strided_slice %0 {offsets = [0, 20], sizes = [8, 8], strides = [1, 1]} : vector<8x32xbf16> to vector<8x8xbf16>
    %cst_31 = arith.constant dense<0.000000e+00> : vector<8x128xf32>
    %60 = tpu.matmul %59, %1, %cst_31 {dimension_numbers = #tpu.dot_dimension_numbers<[1], [0], [0], [1], [0, 0, 1, 1], [], []>} : vector<8x8xbf16>, vector<8x128xbf16>, vector<8x128xf32> -> vector<8x128xf32>
    %61 = vector.broadcast %2 : vector<1x128xf32> to vector<8x128xf32>
    %62 = arith.addf %60, %61 : vector<8x128xf32>
    %cst_32 = arith.constant 0.000000e+00 : f32
    %63 = vector.broadcast %cst_32 : f32 to vector<8x128xf32>
    %64 = arith.maximumf %62, %63 : vector<8x128xf32>
    %65 = arith.truncf %64 : vector<8x128xf32> to vector<8x128xbf16>
    %c5 = arith.constant 5 : index
    %c0_33 = arith.constant 0 : index
    %c0_34 = arith.constant 0 : index
    %66 = vector.load %arg4[%c5, %c0_33, %c0_34] : memref<7x128x128xbf16, #tpu.memory_space<vmem>>, vector<1x128x128xbf16>
    %67 = vector.shape_cast %66 : vector<1x128x128xbf16> to vector<128x128xbf16>
    %cst_35 = arith.constant dense<0.000000e+00> : vector<8x128xf32>
    %68 = tpu.matmul %65, %67, %cst_35 {dimension_numbers = #tpu.dot_dimension_numbers<[1], [0], [0], [1], [0, 0, 1, 1], [], []>} : vector<8x128xbf16>, vector<128x128xbf16>, vector<8x128xf32> -> vector<8x128xf32>
    %69 = arith.addf %58, %68 : vector<8x128xf32>
    %70 = vector.extract_strided_slice %0 {offsets = [0, 24], sizes = [8, 8], strides = [1, 1]} : vector<8x32xbf16> to vector<8x8xbf16>
    %cst_36 = arith.constant dense<0.000000e+00> : vector<8x128xf32>
    %71 = tpu.matmul %70, %1, %cst_36 {dimension_numbers = #tpu.dot_dimension_numbers<[1], [0], [0], [1], [0, 0, 1, 1], [], []>} : vector<8x8xbf16>, vector<8x128xbf16>, vector<8x128xf32> -> vector<8x128xf32>
    %72 = vector.broadcast %2 : vector<1x128xf32> to vector<8x128xf32>
    %73 = arith.addf %71, %72 : vector<8x128xf32>
    %cst_37 = arith.constant 0.000000e+00 : f32
    %74 = vector.broadcast %cst_37 : f32 to vector<8x128xf32>
    %75 = arith.maximumf %73, %74 : vector<8x128xf32>
    %76 = arith.truncf %75 : vector<8x128xf32> to vector<8x128xbf16>
    %c6 = arith.constant 6 : index
    %c0_38 = arith.constant 0 : index
    %c0_39 = arith.constant 0 : index
    %77 = vector.load %arg4[%c6, %c0_38, %c0_39] : memref<7x128x128xbf16, #tpu.memory_space<vmem>>, vector<1x128x128xbf16>
    %78 = vector.shape_cast %77 : vector<1x128x128xbf16> to vector<128x128xbf16>
    %cst_40 = arith.constant dense<0.000000e+00> : vector<8x128xf32>
    %79 = tpu.matmul %76, %78, %cst_40 {dimension_numbers = #tpu.dot_dimension_numbers<[1], [0], [0], [1], [0, 0, 1, 1], [], []>} : vector<8x128xbf16>, vector<128x128xbf16>, vector<8x128xf32> -> vector<8x128xf32>
    %80 = arith.addf %69, %79 : vector<8x128xf32>
    %c0_41 = arith.constant 0 : index
    %c0_42 = arith.constant 0 : index
    %81 = vector.load %arg5[%c0_41, %c0_42] : memref<1x128xf32, #tpu.memory_space<vmem>>, vector<1x128xf32>
    %82 = vector.broadcast %81 : vector<1x128xf32> to vector<8x128xf32>
    %83 = arith.addf %80, %82 : vector<8x128xf32>
    %cst_43 = arith.constant 0.000000e+00 : f32
    %84 = vector.broadcast %cst_43 : f32 to vector<8x128xf32>
    %85 = arith.maximumf %83, %84 : vector<8x128xf32>
    %86 = arith.truncf %85 : vector<8x128xf32> to vector<8x128xbf16>
    %c0_44 = arith.constant 0 : index
    %c0_45 = arith.constant 0 : index
    %87 = vector.load %arg6[%c0_44, %c0_45] : memref<128x128xbf16, #tpu.memory_space<vmem>>, vector<128x128xbf16>
    %cst_46 = arith.constant dense<0.000000e+00> : vector<8x128xf32>
    %88 = tpu.matmul %86, %87, %cst_46 {dimension_numbers = #tpu.dot_dimension_numbers<[1], [0], [0], [1], [0, 0, 1, 1], [], []>} : vector<8x128xbf16>, vector<128x128xbf16>, vector<8x128xf32> -> vector<8x128xf32>
    %c0_47 = arith.constant 0 : index
    %c0_48 = arith.constant 0 : index
    %89 = vector.load %arg7[%c0_47, %c0_48] : memref<1x128xf32, #tpu.memory_space<vmem>>, vector<1x128xf32>
    %90 = vector.broadcast %89 : vector<1x128xf32> to vector<8x128xf32>
    %91 = arith.addf %88, %90 : vector<8x128xf32>
    %c0_49 = arith.constant 0 : index
    %c0_50 = arith.constant 0 : index
    %92 = vector.load %arg8[%c0_49, %c0_50] : memref<8x128xf32, #tpu.memory_space<vmem>>, vector<8x128xf32>
    tpu.vector_store %arg8[%c0_49, %c0_50], %91 {strides = array<i32>} : memref<8x128xf32, #tpu.memory_space<vmem>>, vector<8x128xf32>,
    return
  }
  func.func @transform_0(%arg0: i32) -> (i32, i32) {
    %c0_i32 = arith.constant 0 : i32
    %c0_i32_0 = arith.constant 0 : i32
    return %arg0, %c0_i32 : i32, i32
  }
  func.func @transform_1(%arg0: i32) -> (i32, i32) {
    %c0_i32 = arith.constant 0 : i32
    %c0_i32_0 = arith.constant 0 : i32
    %c0_i32_1 = arith.constant 0 : i32
    return %c0_i32, %c0_i32_0 : i32, i32
  }
  func.func @transform_2(%arg0: i32) -> (i32, i32) {
    %c0_i32 = arith.constant 0 : i32
    %c0_i32_0 = arith.constant 0 : i32
    %c0_i32_1 = arith.constant 0 : i32
    return %c0_i32, %c0_i32_0 : i32, i32
  }
  func.func @transform_3(%arg0: i32) -> (i32, i32, i32) {
    %c0_i32 = arith.constant 0 : i32
    %c0_i32_0 = arith.constant 0 : i32
    %c0_i32_1 = arith.constant 0 : i32
    %c0_i32_2 = arith.constant 0 : i32
    return %c0_i32, %c0_i32_0, %c0_i32_1 : i32, i32, i32
  }
  func.func @transform_4(%arg0: i32) -> (i32, i32) {
    %c0_i32 = arith.constant 0 : i32
    %c0_i32_0 = arith.constant 0 : i32
    %c0_i32_1 = arith.constant 0 : i32
    return %c0_i32, %c0_i32_0 : i32, i32
  }
  func.func @transform_5(%arg0: i32) -> (i32, i32) {
    %c0_i32 = arith.constant 0 : i32
    %c0_i32_0 = arith.constant 0 : i32
    %c0_i32_1 = arith.constant 0 : i32
    return %c0_i32, %c0_i32_0 : i32, i32
  }
  func.func @transform_6(%arg0: i32) -> (i32, i32) {
    %c0_i32 = arith.constant 0 : i32
    %c0_i32_0 = arith.constant 0 : i32
    %c0_i32_1 = arith.constant 0 : i32
    return %c0_i32, %c0_i32_0 : i32, i32
  }
  func.func @transform_7(%arg0: i32) -> (i32, i32) {
    %c0_i32 = arith.constant 0 : i32
    %c0_i32_0 = arith.constant 0 : i32
    return %arg0, %c0_i32 : i32, i32
  }
}

</mosaic_0001>

<bundles_post_ra>
// kernel: cnn_forward.1
= control target key start
LH: loop header
LB: loop body
LE: loop exit
PB: predicated region body
PF: predicated region fallthrough
CT: control target
= control target key end

     0   :  { %vm40_vm0 = vcmask 1043456   ;;  %v1768_v1 = vmov 0.0   ;;  %vm36_vm1 = vcmask 64512   ;;  %vm1769_vm2 = vmmov 0   ;;  %s1771_s29 = smov 116   ;;  %s1772_s9 = smov 120   ;;  %s2166_s0 = inlined_call_operand.vmem [shape: bf16[8,32], index: 0, kind: input, shape index: {}]   ;;  %s2167_s1 = inlined_call_operand.vmem [shape: bf16[8,128], index: 1, kind: input, shape index: {}]   ;;  %s2168_s3 = inlined_call_operand.vmem [shape: bf16[7,128,128], index: 3, kind: input, shape index: {}]   ;;  %s2169_s2 = inlined_call_operand.vmem [shape: f32[1,128], index: 2, kind: input, shape index: {}]   ;;  %s2170_s5 = inlined_call_operand.vmem [shape: bf16[128,128], index: 5, kind: input, shape index: {}]   ;;  %s2171_s4 = inlined_call_operand.vmem [shape: f32[1,128], index: 4, kind: input, shape index: {}]   ;;  %s2172_s6 = inlined_call_operand.vmem [shape: f32[1,128], index: 6, kind: input, shape index: {}]   ;;  %s2173_s7 = inlined_call_operand.vmem [shape: f32[8,128], index: 7, kind: output, shape index: {}]  }
   0x1   :  { %v27_v0 = vld [vmem:[%s2166_s0] sm:$0xf]  ;;  %1493 = vmatprep.subr.bf16.mxu0 %v1768_v1  ;;  %1499 = vmatprep.subr.bf16.mxu1 %v1768_v1  ;;  %v1706_v6 = vld [vmem:[%s2168_s3 + $0x48] sm:$0xff]   ;;  %v1708_v7 = vld [vmem:[%s2168_s3 + $0x50] sm:$0xff]   ;;  %s1773_s17 = smov 112   ;;  %s1775_s22 = smov 104  }
   0x2   :  { %v28_v2 = vld [vmem:[%s2167_s1] sm:$0xf]  ;;  %v1824_v3 = vcombine.low %v27_v0, %v27_v0  ;;  %1495 = vmatprep.mubr.msk.bf16.mxu0 %vm1769_vm2, %v1768_v1  ;;  %1501 = vmatprep.mubr.msk.bf16.mxu1 %vm1769_vm2, %v1768_v1  ;;  %s1770_s1 = smov 124   ;;  %v1710_v8 = vld [vmem:[%s2168_s3 + $0x58] sm:$0xff]   ;;  %v1714_v10 = vld [vmem:[%s2168_s3 + $0x68] sm:$0xff]  }
   0x3   :  { %v1826_v4 = vsel %vm40_vm0, %v28_v2, 0  ;;  %v1704_v5 = vld [vmem:[%s2168_s3 + $0x40] sm:$0xff]   ;;  %v1716_v11 = vld [vmem:[%s2168_s3 + $0x70] sm:$0xff]   ;;  %v1707_v14 = vld [vmem:[%s2168_s3 + $0x8] sm:$0xff]  }
   0x4   :  { %1494 = vmatpush3.bf16.msra.mxu0 %v1826_v4  ;;  %1500 = vmatpush3.bf16.msra.mxu1 %v1826_v4  ;;  %v1712_v9 = vld [vmem:[%s2168_s3 + $0x60] sm:$0xff]   ;;  %v1709_v15 = vld [vmem:[%s2168_s3 + $0x10] sm:$0xff]   ;;  %v1711_v16 = vld [vmem:[%s2168_s3 + $0x18] sm:$0xff]  }
   0x5   :  { %105 = vrot.lane.b32.xlu0 %v1824_v3, %s1770_s1  ;;  %498 = vrot.lane.b32.xlu1 %v1824_v3, %s1771_s29  ;;  %v1705_v12 = vld [vmem:[%s2168_s3] sm:$0xff]   ;;  %v1715_v18 = vld [vmem:[%s2168_s3 + $0x28] sm:$0xff]  }
   0x6   :  { %1505 = vmatprep.subr.bf16.mxu0 %v1768_v1  ;;  %1525 = vmatprep.subr.bf16.mxu1 %v1768_v1  ;;  %v1713_v17 = vld [vmem:[%s2168_s3 + $0x20] sm:$0xff]   ;;  %v1717_v19 = vld [vmem:[%s2168_s3 + $0x30] sm:$0xff]   ;;  %v1718_v20 = vld [vmem:[%s2168_s3 + $0x78] sm:$0xff]  }
   0x7   :  { %1496 = vmatmul.mubr.msk.bf16.vlgmr.msra.gmra.mrb[0].mxu0 %vm36_vm1, %v27_v0  ;;  %v1719_v21 = vld [vmem:[%s2168_s3 + $0x38] sm:$0xff]   ;;  %v1912_v22 = vld [vmem:[%s2169_s2] ss:$0 sm:$0xff]  ;;  %s1774_s2 = smov 108   ;;  %v1721_v31 = vld [vmem:[%s2168_s3 + $0x88] sm:$0xff]  }
   0x8   :  { %1506 = vmatpush3.bf16.msra.mxu0 %v1704_v5  ;;  %1521 = vmatprep.mubr.msk.bf16.mxu0 %vm1769_vm2, %v1768_v1  ;;  %v1720_v30 = vld [vmem:[%s2168_s3 + $0x80] sm:$0xff]   ;;  %v1722_v32 = vld [vmem:[%s2168_s3 + $0x90] sm:$0xff]   ;;  %v1724_v33 = vld [vmem:[%s2168_s3 + $0x98] sm:$0xff]  }
   0x9   :  { %345 = vrot.lane.b32.xlu0 %v1824_v3, %s1772_s9  ;;  %1507 = vmatprep.subr.bf16.mxu0 %v1768_v1  ;;  %v1726_v34 = vld [vmem:[%s2168_s3 + $0xa0] sm:$0xff]   ;;  %v1725_v45 = vld [vmem:[%s2168_s3 + $0xc8] sm:$0xff]   ;;  %v1727_v46 = vld [vmem:[%s2168_s3 + $0xd0] sm:$0xff]  }
   0xa   :  { %651 = vrot.lane.b32.xlu1 %v1824_v3, %s1773_s17  ;;  %v1723_v44 = vld [vmem:[%s2168_s3 + $0xc0] sm:$0xff]   ;;  %v1728_v47 = vld [vmem:[%s2168_s3 + $0xa8] sm:$0xff]   ;;  %v1729_v48 = vld [vmem:[%s2168_s3 + $0xd8] sm:$0xff]  }
   0xb   :  { %v1730_v49 = vld [vmem:[%s2168_s3 + $0xb0] sm:$0xff]   ;;  %v1731_v50 = vld [vmem:[%s2168_s3 + $0xe0] sm:$0xff]   ;;  %v1732_v51 = vld [vmem:[%s2168_s3 + $0xb8] sm:$0xff]  }
   0xc   :  { %1508 = vmatpush3.bf16.msra.mxu0 %v1706_v6  ;;  %v1733_v52 = vld [vmem:[%s2168_s3 + $0xe8] sm:$0xff]   ;;  %v1734_v53 = vld [vmem:[%s2168_s3 + $0xf0] sm:$0xff]   ;;  %v1735_v57 = vld [vmem:[%s2168_s3 + $0xf8] sm:$0xff]  }
   0xd   :  { %1509 = vmatprep.subr.bf16.mxu0 %v1768_v1  ;;  %804 = vrot.lane.b32.xlu0 %v1824_v3, %s1774_s2 }
   0xe   :  { %957 = vrot.lane.b32.xlu1 %v1824_v3, %s1775_s22 }
  0x10   :  { %1510 = vmatpush3.bf16.msra.mxu0 %v1708_v7 }
  0x11   :  { %1511 = vmatprep.subr.bf16.mxu0 %v1768_v1 }
  0x14   :  { %1512 = vmatpush3.bf16.msra.mxu0 %v1710_v8 }
  0x15   :  { %1513 = vmatprep.subr.bf16.mxu0 %v1768_v1 }
  0x18   :  { %1514 = vmatpush3.bf16.msra.mxu0 %v1712_v9 }
  0x19   :  { %1515 = vmatprep.subr.bf16.mxu0 %v1768_v1 }
  0x1c   :  { %1516 = vmatpush3.bf16.msra.mxu0 %v1714_v10 }
  0x1d   :  { %1517 = vmatprep.subr.bf16.mxu0 %v1768_v1 }
  0x20   :  { %1518 = vmatpush3.bf16.msra.mxu0 %v1716_v11 }
  0x21   :  { %1519 = vmatprep.subr.bf16.mxu0 %v1768_v1 }
  0x24   :  { %1520 = vmatpush3.bf16.msra.mxu0 %v1718_v20  ;;  %v1739_v20 = vld [vmem:[%s2168_s3 + $0x140] sm:$0xff]  }
  0x25   :  { %1545 = vmatprep.subr.bf16.mxu0 %v1768_v1 }
  0x77   :  { %v106_v13 = vpop.permute.xlu0 %105  ;;  %v499_v43 = vpop.permute.xlu1 %498 }
  0x78   :  { %1502 = vmatmul.mubr.msk.bf16.vlgmr.msra.gmra.mrb[0].mxu1 %vm36_vm1, %v106_v13 }
  0x79   :  { %1526 = vmatpush3.bf16.msra.mxu1 %v1705_v12  ;;  %1541 = vmatprep.mubr.msk.bf16.mxu1 %vm1769_vm2, %v1768_v1 }
  0x7a   :  { %1527 = vmatprep.subr.bf16.mxu1 %v1768_v1 }
  0x7b   :  { %v346_v42 = vpop.permute.xlu0 %345 }
  0x7d   :  { %1528 = vmatpush3.bf16.msra.mxu1 %v1707_v14 }
  0x7e   :  { %1529 = vmatprep.subr.bf16.mxu1 %v1768_v1 }
  0x81   :  { %1530 = vmatpush3.bf16.msra.mxu1 %v1709_v15  ;;  %v652_v15 = vpop.permute.xlu1 %651 }
  0x82   :  { %1531 = vmatprep.subr.bf16.mxu1 %v1768_v1 }
  0x85   :  { %1532 = vmatpush3.bf16.msra.mxu1 %v1711_v16 }
  0x86   :  { %1533 = vmatprep.subr.bf16.mxu1 %v1768_v1 }
  0x89   :  { %1534 = vmatpush3.bf16.msra.mxu1 %v1713_v17  ;;  %v1736_v17 = vld [vmem:[%s2168_s3 + $0x100] sm:$0xff]  }
  0x8a   :  { %1535 = vmatprep.subr.bf16.mxu1 %v1768_v1 }
  0x8d   :  { %1536 = vmatpush3.bf16.msra.mxu1 %v1715_v18  ;;  %v1737_v18 = vld [vmem:[%s2168_s3 + $0x108] sm:$0xff]  }
  0x8e   :  { %1537 = vmatprep.subr.bf16.mxu1 %v1768_v1 }
  0x91   :  { %1538 = vmatpush3.bf16.msra.mxu1 %v1717_v19  ;;  %v805_v19 = vpop.permute.xlu0 %804 }
  0x92   :  { %1539 = vmatprep.subr.bf16.mxu1 %v1768_v1 }
  0x95   :  { %1540 = vmatpush3.bf16.msra.mxu1 %v1719_v21  ;;  %v1738_v21 = vld [vmem:[%s2168_s3 + $0x110] sm:$0xff]  }
  0x96   :  { %1551 = vmatprep.subr.bf16.mxu1 %v1768_v1 }
  0xda   :  { %v78_v23 = vpop.f32.mrb[0].mxu0 }
  0xdb   :  { %v79_v24 = vadd.f32 %v1912_v22, %v78_v23  ;;  %v1497_v25 = vpop.f32.mrb[1].mxu0  ;;  %v1741_v23 = vld [vmem:[%s2168_s3 + $0x148] sm:$0xff]  }
  0xdc   :  { %v81_v26 = vpop.f32.mrb[2].mxu0  ;;  %v1742_v25 = vld [vmem:[%s2168_s3 + $0x120] sm:$0xff]  }
  0xdd   :  { %v84_v27 = vmax.f32 %v79_v24, 0.0  ;;  %v1498_v28 = vpop.f32.mrb[3].mxu0  ;;  %v1740_v24 = vld [vmem:[%s2168_s3 + $0x118] sm:$0xff]   ;;  %v1743_v26 = vld [vmem:[%s2168_s3 + $0x150] sm:$0xff]  }
  0xde   :  { %v1745_v28 = vld [vmem:[%s2168_s3 + $0x158] sm:$0xff]  }
  0xdf   :  { %v85_v29 = vpack.c.bf16 %v84_v27, %v84_v27  ;;  %v1744_v27 = vld [vmem:[%s2168_s3 + $0x128] sm:$0xff]  }
  0xe1   :  { %1542 = vmatmul.mubr.bf16.vlgmr.msra.gmra.mrb[4].mxu1 %v85_v29  ;;  %v1746_v29 = vld [vmem:[%s2168_s3 + $0x130] sm:$0xff]  }
  0xe2   :  { %1567 = vmatprep.mubr.msk.bf16.mxu1 %vm1769_vm2, %v1768_v1  ;;  %1552 = vmatpush3.bf16.msra.mxu1 %v1720_v30  ;;  %v1747_v30 = vld [vmem:[%s2168_s3 + $0x160] sm:$0xff]  }
  0xe3   :  { %1553 = vmatprep.subr.bf16.mxu1 %v1768_v1 }
  0xe6   :  { %1554 = vmatpush3.bf16.msra.mxu1 %v1721_v31  ;;  %v1748_v31 = vld [vmem:[%s2168_s3 + $0x138] sm:$0xff]  }
  0xe7   :  { %1555 = vmatprep.subr.bf16.mxu1 %v1768_v1 }
  0xea   :  { %1556 = vmatpush3.bf16.msra.mxu1 %v1722_v32  ;;  %v1749_v32 = vld [vmem:[%s2168_s3 + $0x168] sm:$0xff]  }
  0xeb   :  { %1557 = vmatprep.subr.bf16.mxu1 %v1768_v1 }
  0xee   :  { %1558 = vmatpush3.bf16.msra.mxu1 %v1724_v33  ;;  %v1750_v33 = vld [vmem:[%s2168_s3 + $0x170] sm:$0xff]  }
  0xef   :  { %1559 = vmatprep.subr.bf16.mxu1 %v1768_v1 }
  0xf2   :  { %1560 = vmatpush3.bf16.msra.mxu1 %v1726_v34  ;;  %v1751_v34 = vld [vmem:[%s2168_s3 + $0x178] sm:$0xff]  }
  0xf3   :  { %1561 = vmatprep.subr.bf16.mxu1 %v1768_v1 }
  0xf6   :  { %1562 = vmatpush3.bf16.msra.mxu1 %v1728_v47 }
  0xf7   :  { %1563 = vmatprep.subr.bf16.mxu1 %v1768_v1 }
  0xfa   :  { %1564 = vmatpush3.bf16.msra.mxu1 %v1730_v49 }
  0xfb   :  { %1565 = vmatprep.subr.bf16.mxu1 %v1768_v1 }
  0xfe   :  { %1566 = vmatpush3.bf16.msra.mxu1 %v1732_v51 }
  0xff   :  { %1597 = vmatprep.subr.bf16.mxu1 %v1768_v1 }
 0x14b   :  { %v144_v35 = vpop.f32.mrb[0].mxu1 }
 0x14c   :  { %v145_v36 = vadd.f32 %v1912_v22, %v144_v35  ;;  %v1503_v37 = vpop.f32.mrb[1].mxu1 }
 0x14d   :  { %v147_v38 = vpop.f32.mrb[2].mxu1 }
 0x14e   :  { %v150_v39 = vmax.f32 %v145_v36, 0.0  ;;  %v1504_v40 = vpop.f32.mrb[3].mxu1 }
 0x150   :  { %v151_v41 = vpack.c.bf16 %v150_v39, %v150_v39 }
 0x152   :  { %1522 = vmatmul.mubr.bf16.vlgmr.msra.gmra.mrb[4].mxu0 %v151_v41 }
 0x153   :  { %1546 = vmatpush3.bf16.msra.mxu0 %v1826_v4  ;;  %1547 = vmatprep.mubr.msk.bf16.mxu0 %vm1769_vm2, %v1768_v1 }
 0x154   :  { %1571 = vmatprep.subr.bf16.mxu0 %v1768_v1 }
 0x15a   :  { %1548 = vmatmul.mubr.msk.bf16.vlgmr.msra.gmra.mrb[8].mxu0 %vm36_vm1, %v346_v42 }
 0x15b   :  { %1572 = vmatpush3.bf16.msra.mxu0 %v1826_v4  ;;  %1573 = vmatprep.mubr.msk.bf16.mxu0 %vm1769_vm2, %v1768_v1 }
 0x15c   :  { %1577 = vmatprep.subr.bf16.mxu0 %v1768_v1 }
 0x162   :  { %1574 = vmatmul.mubr.msk.bf16.vlgmr.msra.gmra.mrb[12].mxu0 %vm36_vm1, %v499_v43 }
 0x163   :  { %1578 = vmatpush3.bf16.msra.mxu0 %v1723_v44  ;;  %1593 = vmatprep.mubr.msk.bf16.mxu0 %vm1769_vm2, %v1768_v1 }
 0x164   :  { %1579 = vmatprep.subr.bf16.mxu0 %v1768_v1 }
 0x167   :  { %1580 = vmatpush3.bf16.msra.mxu0 %v1725_v45 }
 0x168   :  { %1581 = vmatprep.subr.bf16.mxu0 %v1768_v1 }
 0x16b   :  { %1582 = vmatpush3.bf16.msra.mxu0 %v1727_v46 }
 0x16c   :  { %1583 = vmatprep.subr.bf16.mxu0 %v1768_v1 }
 0x16f   :  { %1584 = vmatpush3.bf16.msra.mxu0 %v1729_v48 }
 0x170   :  { %1585 = vmatprep.subr.bf16.mxu0 %v1768_v1 }
 0x173   :  { %1586 = vmatpush3.bf16.msra.mxu0 %v1731_v50 }
 0x174   :  { %1587 = vmatprep.subr.bf16.mxu0 %v1768_v1 }
 0x177   :  { %1588 = vmatpush3.bf16.msra.mxu0 %v1733_v52 }
 0x178   :  { %1589 = vmatprep.subr.bf16.mxu0 %v1768_v1 }
 0x17b   :  { %1590 = vmatpush3.bf16.msra.mxu0 %v1734_v53 }
 0x17c   :  { %1591 = vmatprep.subr.bf16.mxu0 %v1768_v1 }
 0x17f   :  { %1592 = vmatpush3.bf16.msra.mxu0 %v1735_v57 }
 0x180   :  { %1623 = vmatprep.subr.bf16.mxu0 %v1768_v1 }
 0x1b4   :  { %v339_v54 = vpop.f32.mrb[4].mxu1 }
 0x1b5   :  { %v1543_v55 = vpop.f32.mrb[5].mxu1 }
 0x1b6   :  { %v342_v56 = vpop.f32.mrb[6].mxu1 }
 0x1b7   :  { %v1544_v58 = vpop.f32.mrb[7].mxu1 }
 0x1b8   :  { %v958_v58 = vpop.permute.xlu1 %957 }
 0x225   :  { %v251_v59 = vpop.f32.mrb[4].mxu0 }
 0x226   :  { %v1997_v60 = vadd.f32 %v339_v54, %v251_v59  ;;  %v1523_v61 = vpop.f32.mrb[5].mxu0  ;;  %v1752_v59 = vld [vmem:[%s2168_s3 + $0x180] sm:$0xff]  }
 0x227   :  { %v254_v62 = vpop.f32.mrb[6].mxu0  ;;  %v1754_v61 = vld [vmem:[%s2168_s3 + $0x190] sm:$0xff]  }
 0x228   :  { %v1524_v63 = vpop.f32.mrb[7].mxu0  ;;  %v1755_v62 = vld [vmem:[%s2168_s3 + $0x198] sm:$0xff]  }
 0x229   :  { %v1756_v63 = vld [vmem:[%s2168_s3 + $0x1a0] sm:$0xff]  }
 0x22d   :  { %v384_v0 = vpop.f32.mrb[8].mxu0 }
 0x22e   :  { %v385_v2 = vadd.f32 %v1912_v22, %v384_v0  ;;  %v1549_v5 = vpop.f32.mrb[9].mxu0  ;;  %v1757_v0 = vld [vmem:[%s2168_s3 + $0x1a8] sm:$0xff]  }
 0x22f   :  { %v387_v6 = vpop.f32.mrb[10].mxu0  ;;  %v1759_v5 = vld [vmem:[%s2168_s3 + $0x1b8] sm:$0xff]  }
 0x230   :  { %v390_v7 = vmax.f32 %v385_v2, 0.0  ;;  %v1550_v8 = vpop.f32.mrb[11].mxu0  ;;  %v1758_v2 = vld [vmem:[%s2168_s3 + $0x1b0] sm:$0xff]   ;;  %v1760_v6 = vld [vmem:[%s2170_s5] sm:$0xff]  }
 0x231   :  { %v1762_v8 = vld [vmem:[%s2170_s5 + $0x10] sm:$0xff]  }
 0x232   :  { %v391_v9 = vpack.c.bf16 %v390_v7, %v390_v7  ;;  %v1761_v7 = vld [vmem:[%s2170_s5 + $0x8] sm:$0xff]  }
 0x234   :  { %1568 = vmatmul.mubr.bf16.vlgmr.msra.gmra.mrb[8].mxu1 %v391_v9  ;;  %v1763_v9 = vld [vmem:[%s2170_s5 + $0x18] sm:$0xff]  }
 0x235   :  { %1598 = vmatpush3.bf16.msra.mxu1 %v1826_v4  ;;  %v537_v10 = vpop.f32.mrb[12].mxu0  ;;  %1599 = vmatprep.mubr.msk.bf16.mxu1 %vm1769_vm2, %v1768_v1 }
 0x236   :  { %v538_v3 = vadd.f32 %v1912_v22, %v537_v10  ;;  %1603 = vmatprep.subr.bf16.mxu1 %v1768_v1  ;;  %v1575_v11 = vpop.f32.mrb[13].mxu0  ;;  %v1764_v10 = vld [vmem:[%s2170_s5 + $0x20] sm:$0xff]  }
 0x237   :  { %v540_v12 = vpop.f32.mrb[14].mxu0 }
 0x238   :  { %v543_v13 = vmax.f32 %v538_v3, 0.0  ;;  %v1576_v14 = vpop.f32.mrb[15].mxu0  ;;  %v1765_v3 = vld [vmem:[%s2170_s5 + $0x28] sm:$0xff]  }
 0x23a   :  { %v544_v16 = vpack.c.bf16 %v543_v13, %v543_v13 }
 0x23c   :  { %1594 = vmatmul.mubr.bf16.vlgmr.msra.gmra.mrb[16].mxu0 %v544_v16  ;;  %1600 = vmatmul.mubr.msk.bf16.vlgmr.msra.gmra.mrb[12].mxu1 %vm36_vm1, %v652_v15 }
 0x23d   :  { %1624 = vmatpush3.bf16.msra.mxu0 %v1826_v4  ;;  %1625 = vmatprep.mubr.msk.bf16.mxu0 %vm1769_vm2, %v1768_v1 }
 0x23e   :  { %1604 = vmatpush3.bf16.msra.mxu1 %v1736_v17  ;;  %1629 = vmatprep.subr.bf16.mxu0 %v1768_v1 }
 0x23f   :  { %1605 = vmatprep.subr.bf16.mxu1 %v1768_v1  ;;  %1619 = vmatprep.mubr.msk.bf16.mxu1 %vm1769_vm2, %v1768_v1 }
 0x242   :  { %1606 = vmatpush3.bf16.msra.mxu1 %v1737_v18 }
 0x243   :  { %1607 = vmatprep.subr.bf16.mxu1 %v1768_v1 }
 0x244   :  { %1626 = vmatmul.mubr.msk.bf16.vlgmr.msra.gmra.mrb[20].mxu0 %vm36_vm1, %v805_v19 }
 0x245   :  { %1630 = vmatpush3.bf16.msra.mxu0 %v1739_v20  ;;  %1645 = vmatprep.mubr.msk.bf16.mxu0 %vm1769_vm2, %v1768_v1 }
 0x246   :  { %1608 = vmatpush3.bf16.msra.mxu1 %v1738_v21  ;;  %1631 = vmatprep.subr.bf16.mxu0 %v1768_v1 }
 0x247   :  { %1609 = vmatprep.subr.bf16.mxu1 %v1768_v1 }
 0x249   :  { %1632 = vmatpush3.bf16.msra.mxu0 %v1741_v23 }
 0x24a   :  { %1610 = vmatpush3.bf16.msra.mxu1 %v1740_v24  ;;  %1633 = vmatprep.subr.bf16.mxu0 %v1768_v1 }
 0x24b   :  { %1611 = vmatprep.subr.bf16.mxu1 %v1768_v1 }
 0x24d   :  { %1634 = vmatpush3.bf16.msra.mxu0 %v1743_v26 }
 0x24e   :  { %1612 = vmatpush3.bf16.msra.mxu1 %v1742_v25  ;;  %1635 = vmatprep.subr.bf16.mxu0 %v1768_v1 }
 0x24f   :  { %1613 = vmatprep.subr.bf16.mxu1 %v1768_v1 }
 0x251   :  { %1636 = vmatpush3.bf16.msra.mxu0 %v1745_v28 }
 0x252   :  { %1614 = vmatpush3.bf16.msra.mxu1 %v1744_v27  ;;  %1637 = vmatprep.subr.bf16.mxu0 %v1768_v1 }
 0x253   :  { %1615 = vmatprep.subr.bf16.mxu1 %v1768_v1 }
 0x255   :  { %1638 = vmatpush3.bf16.msra.mxu0 %v1747_v30 }
 0x256   :  { %1616 = vmatpush3.bf16.msra.mxu1 %v1746_v29  ;;  %1639 = vmatprep.subr.bf16.mxu0 %v1768_v1  ;;  %v1766_v29 = vld [vmem:[%s2170_s5 + $0x30] sm:$0xff]  }
 0x257   :  { %1617 = vmatprep.subr.bf16.mxu1 %v1768_v1 }
 0x259   :  { %1640 = vmatpush3.bf16.msra.mxu0 %v1749_v32 }
 0x25a   :  { %1618 = vmatpush3.bf16.msra.mxu1 %v1748_v31  ;;  %1641 = vmatprep.subr.bf16.mxu0 %v1768_v1  ;;  %v1397_v31 = vld [vmem:[%s2171_s4] ss:$0 sm:$0xff] }
 0x25b   :  { %1649 = vmatprep.subr.bf16.mxu1 %v1768_v1 }
 0x25d   :  { %1642 = vmatpush3.bf16.msra.mxu0 %v1750_v33 }
 0x25e   :  { %1643 = vmatprep.subr.bf16.mxu0 %v1768_v1 }
 0x261   :  { %1644 = vmatpush3.bf16.msra.mxu0 %v1751_v34 }
 0x262   :  { %1675 = vmatprep.subr.bf16.mxu0 %v1768_v1 }
 0x307   :  { %v491_v35 = vpop.f32.mrb[8].mxu1 }
 0x308   :  { %v497_v36 = vadd.f32 %v491_v35, %v1997_v60  ;;  %v1569_v37 = vpop.f32.mrb[9].mxu1 }
 0x309   :  { %v494_v38 = vpop.f32.mrb[10].mxu1 }
 0x30a   :  { %v1570_v39 = vpop.f32.mrb[11].mxu1 }
 0x30f   :  { %v644_v40 = vpop.f32.mrb[16].mxu0  ;;  %v690_v41 = vpop.f32.mrb[12].mxu1 }
 0x310   :  { %v2080_v42 = vadd.f32 %v644_v40, %v497_v36  ;;  %v691_v43 = vadd.f32 %v1912_v22, %v690_v41  ;;  %v1601_v44 = vpop.f32.mrb[13].mxu1  ;;  %v1595_v45 = vpop.f32.mrb[17].mxu0 }
 0x311   :  { %v693_v46 = vpop.f32.mrb[14].mxu1  ;;  %v647_v47 = vpop.f32.mrb[18].mxu0 }
 0x312   :  { %v696_v48 = vmax.f32 %v691_v43, 0.0  ;;  %v1602_v49 = vpop.f32.mrb[15].mxu1  ;;  %v1596_v50 = vpop.f32.mrb[19].mxu0 }
 0x314   :  { %v697_v51 = vpack.c.bf16 %v696_v48, %v696_v48 }
 0x316   :  { %1620 = vmatmul.mubr.bf16.vlgmr.msra.gmra.mrb[16].mxu1 %v697_v51 }
 0x317   :  { %1650 = vmatpush3.bf16.msra.mxu1 %v1826_v4  ;;  %v843_v52 = vpop.f32.mrb[20].mxu0  ;;  %1651 = vmatprep.mubr.msk.bf16.mxu1 %vm1769_vm2, %v1768_v1  ;;  %v1753_v4 = vld [vmem:[%s2168_s3 + $0x188] sm:$0xff]  }
 0x318   :  { %v844_v53 = vadd.f32 %v1912_v22, %v843_v52  ;;  %1655 = vmatprep.subr.bf16.mxu1 %v1768_v1  ;;  %v1627_v54 = vpop.f32.mrb[21].mxu0 }
 0x319   :  { %v846_v55 = vpop.f32.mrb[22].mxu0 }
 0x31a   :  { %v849_v56 = vmax.f32 %v844_v53, 0.0  ;;  %v1628_v57 = vpop.f32.mrb[23].mxu0 }
 0x31c   :  { %v850_v60 = vpack.c.bf16 %v849_v56, %v849_v56 }
 0x31e   :  { %1646 = vmatmul.mubr.bf16.vlgmr.msra.gmra.mrb[24].mxu0 %v850_v60  ;;  %1652 = vmatmul.mubr.msk.bf16.vlgmr.msra.gmra.mrb[20].mxu1 %vm36_vm1, %v958_v58 }
 0x31f   :  { %1656 = vmatpush3.bf16.msra.mxu1 %v1752_v59  ;;  %1671 = vmatprep.mubr.msk.bf16.mxu1 %vm1769_vm2, %v1768_v1 }
 0x320   :  { %1657 = vmatprep.subr.bf16.mxu1 %v1768_v1  ;;  %1691 = vmatprep.mubr.msk.bf16.mxu0 %vm1769_vm2, %v1768_v1 }
 0x321   :  { %1676 = vmatpush3.bf16.msra.mxu0 %v1760_v6 }
 0x322   :  { %1677 = vmatprep.subr.bf16.mxu0 %v1768_v1 }
 0x323   :  { %1658 = vmatpush3.bf16.msra.mxu1 %v1753_v4 }
 0x324   :  { %1659 = vmatprep.subr.bf16.mxu1 %v1768_v1 }
 0x325   :  { %1678 = vmatpush3.bf16.msra.mxu0 %v1761_v7 }
 0x326   :  { %1679 = vmatprep.subr.bf16.mxu0 %v1768_v1 }
 0x327   :  { %1660 = vmatpush3.bf16.msra.mxu1 %v1754_v61 }
 0x328   :  { %1661 = vmatprep.subr.bf16.mxu1 %v1768_v1 }
 0x329   :  { %1680 = vmatpush3.bf16.msra.mxu0 %v1762_v8 }
 0x32a   :  { %1681 = vmatprep.subr.bf16.mxu0 %v1768_v1 }
 0x32b   :  { %1662 = vmatpush3.bf16.msra.mxu1 %v1755_v62 }
 0x32c   :  { %1663 = vmatprep.subr.bf16.mxu1 %v1768_v1 }
 0x32d   :  { %1682 = vmatpush3.bf16.msra.mxu0 %v1763_v9 }
 0x32e   :  { %1683 = vmatprep.subr.bf16.mxu0 %v1768_v1 }
 0x32f   :  { %1664 = vmatpush3.bf16.msra.mxu1 %v1756_v63 }
 0x330   :  { %1665 = vmatprep.subr.bf16.mxu1 %v1768_v1 }
 0x331   :  { %1684 = vmatpush3.bf16.msra.mxu0 %v1764_v10 }
 0x332   :  { %1685 = vmatprep.subr.bf16.mxu0 %v1768_v1 }
 0x333   :  { %1666 = vmatpush3.bf16.msra.mxu1 %v1757_v0 }
 0x334   :  { %1667 = vmatprep.subr.bf16.mxu1 %v1768_v1 }
 0x335   :  { %1686 = vmatpush3.bf16.msra.mxu0 %v1765_v3 }
 0x336   :  { %1687 = vmatprep.subr.bf16.mxu0 %v1768_v1 }
 0x337   :  { %1668 = vmatpush3.bf16.msra.mxu1 %v1758_v2 }
 0x338   :  { %1669 = vmatprep.subr.bf16.mxu1 %v1768_v1 }
 0x339   :  { %1688 = vmatpush3.bf16.msra.mxu0 %v1766_v29 }
 0x33a   :  { %1689 = vmatprep.subr.bf16.mxu0 %v1768_v1  ;;  %v1398_v1 = vld [vmem:[%s2172_s6] ss:$0 sm:$0xff] }
 0x33b   :  { %1670 = vmatpush3.bf16.msra.mxu1 %v1759_v5 }
 0x3e9   :  { %v797_v11 = vpop.f32.mrb[16].mxu1 }
 0x3ea   :  { %v803_v12 = vadd.f32 %v797_v11, %v2080_v42  ;;  %v1621_v13 = vpop.f32.mrb[17].mxu1 }
 0x3eb   :  { %v800_v14 = vpop.f32.mrb[18].mxu1 }
 0x3ec   :  { %v1622_v15 = vpop.f32.mrb[19].mxu1 }
 0x3f1   :  { %v950_v16 = vpop.f32.mrb[24].mxu0  ;;  %v996_v17 = vpop.f32.mrb[20].mxu1 }
 0x3f2   :  { %v956_v18 = vadd.f32 %v950_v16, %v803_v12  ;;  %v997_v19 = vadd.f32 %v1912_v22, %v996_v17  ;;  %v1653_v20 = vpop.f32.mrb[21].mxu1  ;;  %v1647_v21 = vpop.f32.mrb[25].mxu0  ;;  %v1767_v22 = vld [vmem:[%s2170_s5 + $0x38] sm:$0xff]  }
 0x3f3   :  { %v999_v23 = vpop.f32.mrb[22].mxu1  ;;  %v953_v24 = vpop.f32.mrb[26].mxu0  ;;  %1690 = vmatpush3.bf16.msra.mxu0 %v1767_v22 }
 0x3f4   :  { %v1002_v25 = vmax.f32 %v997_v19, 0.0  ;;  %v1654_v26 = vpop.f32.mrb[23].mxu1  ;;  %v1648_v27 = vpop.f32.mrb[27].mxu0 }
 0x3f6   :  { %v1003_v28 = vpack.c.bf16 %v1002_v25, %v1002_v25 }
 0x3f8   :  { %1672 = vmatmul.mubr.bf16.vlgmr.msra.gmra.mrb[24].mxu1 %v1003_v28 }
 0x4cb   :  { %v1103_v30 = vpop.f32.mrb[24].mxu1 }
 0x4cc   :  { %v1109_v32 = vadd.f32 %v1103_v30, %v956_v18  ;;  %v1673_v33 = vpop.f32.mrb[25].mxu1 }
 0x4cd   :  { %v1106_v34 = vpop.f32.mrb[26].mxu1 }
 0x4ce   :  { %v1117_v35 = vadd.f32 %v1397_v31, %v1109_v32  ;;  %v1674_v36 = vpop.f32.mrb[27].mxu1 }
 0x4d0   :  { %v1118_v37 = vmax.f32 %v1117_v35, 0.0 }
 0x4d2   :  { %v1119_v38 = vpack.c.bf16 %v1118_v37, %v1118_v37 }
 0x4d4   :  { %1692 = vmatmul.mubr.bf16.vlgmr.msra.gmra.mrb[28].mxu0 %v1119_v38 }
 0x5a7   :  { %v1225_v39 = vpop.f32.mrb[28].mxu0 }
 0x5a8   :  { %v1226_v40 = vadd.f32 %v1398_v1, %v1225_v39  ;;  %v1693_v41 = vpop.f32.mrb[29].mxu0 }
 0x5a9   :  { %v1228_v42 = vpop.f32.mrb[30].mxu0 }
 0x5aa   :  { %1231 = vst [vmem:[%s2173_s7] sm:$0xff] %v1226_v40  ;;  %v1694_v43 = vpop.f32.mrb[31].mxu0 }

</bundles_post_ra>
